<compile_context>
chip_gen: v5e
topology: v5e:2x2
jax: 0.10.0
libtpu: 0.0.40
codegen_flags: <defaults>
</compile_context>

<pallas_src>
import functools

import jax
import jax.numpy as jnp
from jax.experimental import pallas as pl
from jax.experimental.pallas import tpu as pltpu


STD_EPS = 1e-6
_TILE_BUDGET_F32 = 4 << 20     # ~4 MiB f32-equivalent per tile (roofline sweet spot)
_FUSE_BUDGET = 16 << 20        # fused single-kernel path if in+out+f32 temp fit here
_VMEM_CAP = 48 << 20           # never request more than 48 MiB scoped VMEM (v7x headroom)


def _vmem_limit(bytes_needed):
    return int(min(_VMEM_CAP, max(8 << 20, bytes_needed)))


# ---------------------------------------------------------------------------
# Fused fast path: whole activation resident in VMEM.
# Centered two-pass statistics (numerically robust) + affine + logdet, so x is
# read from HBM exactly once and written exactly once.
# ---------------------------------------------------------------------------
def _fused_kernel(x_ref, out_ref, ld_ref, *, count, hw, use_shift):
    x = x_ref[...].astype(jnp.float32)                          # (B, C, HW)
    mean = jnp.sum(x, axis=(0, 2), keepdims=True) / count       # (1, C, 1)
    d = x - mean
    var = jnp.sum(d * d, axis=(0, 2), keepdims=True) / (count - 1.0)
    std = jnp.sqrt(jnp.maximum(var, 0.0))
    scale = 1.0 / (std + STD_EPS)                                # (1, C, 1)
    if use_shift:
        bias = jnp.zeros_like(scale)                             # loc keeps zero init
    else:
        bias = -mean * scale                                     # scale*(x+loc) = x*scale+bias
    out_ref[...] = (x * scale + bias).astype(out_ref.dtype)
    ld_ref[...] = hw * jnp.sum(jnp.log(jnp.abs(scale)), keepdims=True)   # (1,1,1)


# ---------------------------------------------------------------------------
# General path, pass 1: per-row (batch-sample x channel) sum / sum-of-squares.
# Resident accumulators across the "arbitrary" HW-chunk axis; batch-tile axis
# is "parallel" (dual-TC on v7x).  Lane-axis reduce only, no reshapes.
# ---------------------------------------------------------------------------
def _stats_kernel(x_ref, rsum_ref, rsq_ref):
    @pl.when(pl.program_id(1) == 0)
    def _():
        rsum_ref[...] = jnp.zeros_like(rsum_ref)
        rsq_ref[...] = jnp.zeros_like(rsq_ref)

    x = x_ref[...].astype(jnp.float32)                           # (bt*C, hwt)
    rsum_ref[...] += jnp.sum(x, axis=1, keepdims=True)           # (bt*C, 1)
    rsq_ref[...] += jnp.sum(x * x, axis=1, keepdims=True)


# ---------------------------------------------------------------------------
# General path, pass 2: the ActNorm affine map (mem-bound), native dtype I/O,
# bias = loc*scale precomputed so the inner loop is a single fused mul-add.
# ---------------------------------------------------------------------------
def _affine_kernel(x_ref, scale_ref, bias_ref, out_ref):
    out_ref[...] = (x_ref[...] * scale_ref[...] + bias_ref[...]).astype(out_ref.dtype)


# ---------------------------------------------------------------------------
# Tile selection: row blocks of bt*C rows (multiple of 8 sublanes, or all rows)
# and lane blocks of hwt (multiple of 128 lanes, or all of H*W).
# ---------------------------------------------------------------------------
def _divisors(n):
    out = set()
    d = 1
    while d * d <= n:
        if n % d == 0:
            out.add(d)
            out.add(n // d)
        d += 1
    return sorted(out)


def _pick_tiles(B, C, HW, batch_tile=None, hw_tile=None, budget=_TILE_BUDGET_F32):
    bts = [d for d in _divisors(B) if (d * C) % 8 == 0 or d == B]
    hwts = sorted({d for d in _divisors(HW) if d % 128 == 0} | {HW})

    if hw_tile is not None:
        assert HW % hw_tile == 0 and (hw_tile % 128 == 0 or hw_tile == HW), \
            "hw_tile must divide H*W and be a multiple of 128 (or H*W itself)"
        hwt = hw_tile
    else:
        bt_min = min(bts)
        if bt_min * C * HW * 4 <= budget:
            hwt = HW                                   # lane-dense, fewest grid steps
        else:
            fitting = [h for h in hwts if bt_min * C * h * 4 <= budget]
            hwt = max(fitting) if fitting else min(hwts)

    if batch_tile is not None:
        assert B % batch_tile == 0 and \
            ((batch_tile * C) % 8 == 0 or batch_tile == B), \
            "batch_tile must divide B and batch_tile*C must be a multiple of 8"
        bt = batch_tile
    else:
        fitting = [b for b in bts if b * C * hwt * 4 <= budget]
        bt = max(fitting) if fitting else min(bts)
    return bt, hwt


def actnorm_forward(x, *, use_shift=False, logdet=True,
                    batch_tile=None, hw_tile=None, fuse=None):
    """Forward of a freshly-constructed ActNorm (data-dependent init + affine).

    Returns (out, logdet) when logdet=True, else out.  `out` keeps x's dtype.
    """
    B, C, H, W = x.shape
    HW = H * W
    N = B * C * HW
    elt = x.dtype.itemsize
    count = float(B * HW)

    if fuse is None:
        fuse = (2 * N * elt + N * 4) <= _FUSE_BUDGET

    # ------------------------- fused single-kernel path ----------------------
    if fuse:
        x3 = x.reshape(B, C, HW)                       # metadata-only reshape
        out3, ld3 = pl.pallas_call(
            functools.partial(_fused_kernel, count=count, hw=float(HW),
                              use_shift=use_shift),
            out_shape=(jax.ShapeDtypeStruct((B, C, HW), x.dtype),
                       jax.ShapeDtypeStruct((1, 1, 1), jnp.float32)),
            grid=(1,),
            in_specs=[pl.BlockSpec((B, C, HW), lambda i: (0, 0, 0))],
            out_specs=(pl.BlockSpec((B, C, HW), lambda i: (0, 0, 0)),
                       pl.BlockSpec((1, 1, 1), lambda i: (0, 0, 0))),
            compiler_params=pltpu.CompilerParams(
                dimension_semantics=("arbitrary",),
                vmem_limit_bytes=_vmem_limit(2 * (2 * N * elt + N * 4) + (4 << 20))),
            cost_estimate=pl.CostEstimate(
                flops=8 * N, transcendentals=3 * C, bytes_accessed=2 * N * elt),
        )(x3)
        out = out3.reshape(B, C, H, W)
        ld = ld3[0, 0, 0]
        return (out, ld) if logdet else out

    # ------------------------- general two-pass path -------------------------
    x2 = x.reshape(B * C, HW)                          # free; sublane-dense rows
    bt, hwt = _pick_tiles(B, C, HW, batch_tile, hw_tile)
    btc = bt * C
    n_bt, n_hw = (B * C) // btc, HW // hwt
    vlim = _vmem_limit(8 * btc * hwt * 4 + (2 << 20))

    # pass 1: per-row sum / sum-of-squares partials
    rsum, rsq = pl.pallas_call(
        _stats_kernel,
        out_shape=(jax.ShapeDtypeStruct((B * C, 1), jnp.float32),
                   jax.ShapeDtypeStruct((B * C, 1), jnp.float32)),
        grid=(n_bt, n_hw),
        in_specs=[pl.BlockSpec((btc, hwt), lambda i, j: (i, j))],
        out_specs=(pl.BlockSpec((btc, 1), lambda i, j: (i, 0)),
                   pl.BlockSpec((btc, 1), lambda i, j: (i, 0))),
        compiler_params=pltpu.CompilerParams(
            dimension_semantics=("parallel", "arbitrary"),
            vmem_limit_bytes=vlim),
        cost_estimate=pl.CostEstimate(
            flops=3 * N, transcendentals=0,
            bytes_accessed=N * elt + 2 * B * C * 4),
    )(x2)

    # finalize (tiny, plain jnp — no extra kernel launch)
    chan_sum = rsum.reshape(B, C).sum(axis=0)
    chan_sq = rsq.reshape(B, C).sum(axis=0)
    mean = chan_sum / count
    var = (chan_sq - count * mean * mean) / (count - 1.0)
    std = jnp.sqrt(jnp.maximum(var, 0.0))
    scale = 1.0 / (std + STD_EPS)                      # (C,)
    loc = jnp.zeros_like(mean) if use_shift else -mean
    bias = loc * scale
    ld = HW * jnp.sum(jnp.log(jnp.abs(scale)))
    scale_rows = jnp.tile(scale, B)[:, None]           # (B*C, 1), row = b*C + c
    bias_rows = jnp.tile(bias, B)[:, None]

    # pass 2: out = x * scale + bias  (native dtype, lane-dense stores)
    out2 = pl.pallas_call(
        _affine_kernel,
        out_shape=jax.ShapeDtypeStruct((B * C, HW), x.dtype),
        grid=(n_bt, n_hw),
        in_specs=[pl.BlockSpec((btc, hwt), lambda i, j: (i, j)),
                  pl.BlockSpec((btc, 1), lambda i, j: (i, 0)),
                  pl.BlockSpec((btc, 1), lambda i, j: (i, 0))],
        out_specs=pl.BlockSpec((btc, hwt), lambda i, j: (i, j)),
        compiler_params=pltpu.CompilerParams(
            dimension_semantics=("parallel", "parallel"),
            vmem_limit_bytes=vlim),
        cost_estimate=pl.CostEstimate(
            flops=2 * N, transcendentals=0,
            bytes_accessed=2 * N * elt + 2 * B * C * 4),
    )(x2, scale_rows, bias_rows)

    out = out2.reshape(B, C, H, W)
    return (out, ld) if logdet else out


if __name__ == "__main__":
    # small shapes consistent with the module: batch=2, channels=4, spatial=16
    B, C, H, W = 2, 4, 16, 16
    key = jax.random.PRNGKey(0)
    x = jax.random.normal(key, (B, C, H, W), jnp.float32)

    def reference(xin):
        xf = xin.astype(jnp.float32)
        flat = jnp.transpose(xf, (1, 0, 2, 3)).reshape(C, -1)
        mean = flat.mean(axis=1)
        std = flat.std(axis=1, ddof=1)                  # torch .std() is unbiased
        scale_r = 1.0 / (std + 1e-6)
        loc_r = -mean
        out_r = scale_r[None, :, None, None] * (xf + loc_r[None, :, None, None])
        ld_r = H * W * jnp.sum(jnp.log(jnp.abs(scale_r)))
        return out_r, ld_r

    out_r, ld_r = reference(x)

    # 1) fused single-kernel path (default for small activations)
    out1, ld1 = actnorm_forward(x)
    jax.block_until_ready((out1, ld1))
    assert out1.shape == (B, C, H, W) and out1.dtype == x.dtype
    assert jnp.allclose(out1, out_r, rtol=2e-4, atol=2e-5), "fused output mismatch"
    assert jnp.allclose(ld1, ld_r, rtol=2e-4, atol=2e-5), "fused logdet mismatch"

    # 2) general two-pass path, HW-tiled (exercises the resident accumulators)
    out2, ld2 = actnorm_forward(x, fuse=False, hw_tile=128)
    jax.block_until_ready((out2, ld2))
    assert jnp.allclose(out2, out_r, rtol=2e-4, atol=2e-5), "two-pass output mismatch"
    assert jnp.allclose(ld2, ld_r, rtol=2e-4, atol=2e-5), "two-pass logdet mismatch"

    # 3) native bf16 input stays bf16 end-to-end (no host-side upcast)
    xb = x.astype(jnp.bfloat16)
    out3, ld3 = actnorm_forward(xb, fuse=False, hw_tile=128)
    jax.block_until_ready((out3, ld3))
    out_rb, ld_rb = reference(xb)
    assert out3.dtype == jnp.bfloat16
    assert jnp.allclose(out3.astype(jnp.float32), out_rb, rtol=2e-2, atol=2e-2)
    assert jnp.allclose(ld3, ld_rb, rtol=2e-2, atol=2e-2)

    print("KERNEL_OK")
</pallas_src>

<mosaic_0001>
module attributes {stable_mosaic.version = 11 : i64} {
  func.func @_fused_kernel(%arg0: i32, %arg1: memref<2x4x256xf32, #tpu.memory_space<vmem>>, %arg2: memref<2x4x256xf32, #tpu.memory_space<vmem>>, %arg3: memref<1x1x1xf32, #tpu.memory_space<vmem>>) attributes {dimension_semantics = [#tpu.dimension_semantics<arbitrary>], iteration_bounds = array<i64: 1>, scalar_prefetch = 0 : i64, scratch_operands = 0 : i64, tpu.core_type = #tpu.core_type<tc>, window_params = [{pipeline_mode = #tpu.pipeline_mode<synchronous>, transform_indices = @transform_0, window_bounds = array<i64: 2, 4, 256>}, {pipeline_mode = #tpu.pipeline_mode<synchronous>, transform_indices = @transform_1, window_bounds = array<i64: 2, 4, 256>}, {pipeline_mode = #tpu.pipeline_mode<synchronous>, transform_indices = @transform_2, window_bounds = array<i64: 1, 1, 1>}]} {
    %c0 = arith.constant 0 : index
    %c0_0 = arith.constant 0 : index
    %c0_1 = arith.constant 0 : index
    %0 = vector.load %arg1[%c0, %c0_0, %c0_1] : memref<2x4x256xf32, #tpu.memory_space<vmem>>, vector<2x4x256xf32>
    %cst = arith.constant dense<0.000000e+00> : vector<4xf32>
    %1 = vector.multi_reduction <add>, %0, %cst [0, 2] : vector<2x4x256xf32> to vector<4xf32>
    %2 = vector.shape_cast %1 : vector<4xf32> to vector<1x4x1xf32>
    %cst_2 = arith.constant 5.120000e+02 : f32
    %3 = vector.broadcast %cst_2 : f32 to vector<1x4x1xf32>
    %4 = arith.divf %2, %3 : vector<1x4x1xf32>
    %5 = vector.broadcast %4 : vector<1x4x1xf32> to vector<2x4x256xf32>
    %6 = arith.subf %0, %5 : vector<2x4x256xf32>
    %7 = arith.mulf %6, %6 : vector<2x4x256xf32>
    %cst_3 = arith.constant dense<0.000000e+00> : vector<4xf32>
    %8 = vector.multi_reduction <add>, %7, %cst_3 [0, 2] : vector<2x4x256xf32> to vector<4xf32>
    %9 = vector.shape_cast %8 : vector<4xf32> to vector<1x4x1xf32>
    %cst_4 = arith.constant 5.110000e+02 : f32
    %10 = vector.broadcast %cst_4 : f32 to vector<1x4x1xf32>
    %11 = arith.divf %9, %10 : vector<1x4x1xf32>
    %cst_5 = arith.constant 0.000000e+00 : f32
    %12 = vector.broadcast %cst_5 : f32 to vector<1x4x1xf32>
    %13 = arith.maximumf %11, %12 : vector<1x4x1xf32>
    %14 = math.sqrt %13 : vector<1x4x1xf32>
    %cst_6 = arith.constant 9.99999997E-7 : f32
    %15 = vector.broadcast %cst_6 : f32 to vector<1x4x1xf32>
    %16 = arith.addf %14, %15 : vector<1x4x1xf32>
    %cst_7 = arith.constant 1.000000e+00 : f32
    %17 = vector.broadcast %cst_7 : f32 to vector<1x4x1xf32>
    %18 = arith.divf %17, %16 : vector<1x4x1xf32>
    %cst_8 = arith.constant 0.000000e+00 : f32
    %19 = vector.broadcast %cst_8 : f32 to vector<1x4x1xf32>
    %20 = arith.subf %19, %4 : vector<1x4x1xf32>
    %21 = arith.mulf %20, %18 : vector<1x4x1xf32>
    %22 = vector.broadcast %18 : vector<1x4x1xf32> to vector<2x4x256xf32>
    %23 = arith.mulf %0, %22 : vector<2x4x256xf32>
    %24 = vector.broadcast %21 : vector<1x4x1xf32> to vector<2x4x256xf32>
    %25 = arith.addf %23, %24 : vector<2x4x256xf32>
    %c0_9 = arith.constant 0 : index
    %c0_10 = arith.constant 0 : index
    %c0_11 = arith.constant 0 : index
    %26 = vector.load %arg2[%c0_9, %c0_10, %c0_11] : memref<2x4x256xf32, #tpu.memory_space<vmem>>, vector<2x4x256xf32>
    tpu.vector_store %arg2[%c0_9, %c0_10, %c0_11], %25 {strides = array<i32>} : memref<2x4x256xf32, #tpu.memory_space<vmem>>, vector<2x4x256xf32>,
    %27 = math.absf %18 : vector<1x4x1xf32>
    %28 = math.log %27 : vector<1x4x1xf32>
    %29 = vector.shape_cast %28 : vector<1x4x1xf32> to vector<1x1x4x1xf32>
    %cst_12 = arith.constant dense<0.000000e+00> : vector<1xf32>
    %30 = vector.multi_reduction <add>, %29, %cst_12 [1, 2, 3] : vector<1x1x4x1xf32> to vector<1xf32>
    %31 = vector.shape_cast %30 : vector<1xf32> to vector<1x1x1x1xf32>
    %32 = vector.extract %31[0, 0, 0, 0] : f32 from vector<1x1x1x1xf32>
    %33 = vector.broadcast %32 : f32 to vector<1x1x1xf32>
    %cst_13 = arith.constant 2.560000e+02 : f32
    %34 = vector.broadcast %cst_13 : f32 to vector<1x1x1xf32>
    %35 = arith.mulf %34, %33 : vector<1x1x1xf32>
    %c0_14 = arith.constant 0 : index
    %c0_15 = arith.constant 0 : index
    %c0_16 = arith.constant 0 : index
    %36 = vector.load %arg3[%c0_14, %c0_15, %c0_16] : memref<1x1x1xf32, #tpu.memory_space<vmem>>, vector<1x1x1xf32>
    tpu.vector_store %arg3[%c0_14, %c0_15, %c0_16], %35 {strides = array<i32>} : memref<1x1x1xf32, #tpu.memory_space<vmem>>, vector<1x1x1xf32>,
    return
  }
  func.func @transform_0(%arg0: i32) -> (i32, i32, i32) {
    %c0_i32 = arith.constant 0 : i32
    %c0_i32_0 = arith.constant 0 : i32
    %c0_i32_1 = arith.constant 0 : i32
    %c0_i32_2 = arith.constant 0 : i32
    return %c0_i32, %c0_i32_0, %c0_i32_1 : i32, i32, i32
  }
  func.func @transform_1(%arg0: i32) -> (i32, i32, i32) {
    %c0_i32 = arith.constant 0 : i32
    %c0_i32_0 = arith.constant 0 : i32
    %c0_i32_1 = arith.constant 0 : i32
    %c0_i32_2 = arith.constant 0 : i32
    return %c0_i32, %c0_i32_0, %c0_i32_1 : i32, i32, i32
  }
  func.func @transform_2(%arg0: i32) -> (i32, i32, i32) {
    %c0_i32 = arith.constant 0 : i32
    %c0_i32_0 = arith.constant 0 : i32
    %c0_i32_1 = arith.constant 0 : i32
    %c0_i32_2 = arith.constant 0 : i32
    return %c0_i32, %c0_i32_0, %c0_i32_1 : i32, i32, i32
  }
}

</mosaic_0001>

<bundles_post_ra>
// kernel: tpu_custom_call.1
= control target key start
LH: loop header
LB: loop body
LE: loop exit
PB: predicated region body
PF: predicated region fallthrough
CT: control target
= control target key end

     0   :  { %8 = vsyncpa [#allocation3], 0  ;;  %s366_s0 = inlined_call_operand.hbm [shape: f32[2,4,256], index: 0, kind: input, shape index: {}]   ;;  %s367_s1 = inlined_call_operand.hbm [shape: f32[2,4,256], index: 1, kind: output, shape index: {0}]   ;;  %s368_s2 = inlined_call_operand.hbm [shape: f32[1,1,1], index: 2, kind: output, shape index: {1}]  }
   0x1   :  { %9 = vsyncpa [#allocation4], 0 }
   0x2   :  { %10 = vsyncpa [#allocation7], 0  ;;  %s15_s11 = sshll.u32 %s366_s0, 4  ;;  %s301_s12 = smov [#allocation2]   ;;  %s16_s11 = int_to_ptr.hbm [resolvable:$true] %s15_s11 }
   0x3   :  { %s17_s13 = sshll.u32 %s301_s12, 4  ;;  %s302_s14 = smov 128   ;;  %s18_s13 = int_to_ptr.vmem [resolvable:$true] %s17_s13 }
   0x4   :  { %s303_s15 = smov 8  }
   0x5   :  { %23 = dma.hbm_to_vmem [thread:$0]  %s16_s11, 256, %s18_s13, [#allocation3], %s302_s14, %s302_s14, %s303_s15  }
   0x6   :  { %295 = dma.done.wait [#allocation3], 256  }
   0x7   :  { %296 = vsyncadd [#allocation3], 4294967040  ;;  %v330_v0 = vld [vmem:[#allocation2] sm:$0xff]  ;;  %v332_v1 = vld [vmem:[#allocation2 + $0x8] sm:$0xff]  ;;  %vm43_vm0 = vcmask 1043456   ;;  %v304_v13 = vmov 512.0  }
   0x8   :  { %32 = vst [vmem:[#allocation1] ss:$2 sm:$0xff] %v330_v0  ;;  %213 = vrcp.f32 %v304_v13  ;;  %v305_v19 = vmov 839922192   ;;  %v306_v41 = vmov 511.0   ;;  %vm153_vm9 = vcmask 3072  }
   0x9   :  { %36 = vst [vmem:[#allocation1 + $0x10] ss:$2 sm:$0xff] %v332_v1  ;;  %v63_v20 = vunpack.c.l.s4 %v305_v19  ;;  %215 = vrcp.f32 %v306_v41  ;;  %s174_s17 = sshll.u32 %s367_s1, 4  ;;  %s307_s18 = smov [#allocation5]   ;;  %vm166_vm10 = vcmask 0   ;;  %s175_s17 = int_to_ptr.hbm [resolvable:$true] %s174_s17 }
   0xa   :  { %s172_s19 = sshll.u32 %s307_s18, 4  ;;  %s308_s20 = smov [#allocation6]   ;;  %s173_s19 = int_to_ptr.vmem [resolvable:$true] %s172_s19 }
   0xb   :  { %v340_v22 = vunpack.c.0.s8 %v63_v20  ;;  %s186_s21 = sshll.u32 %s308_s20, 4  ;;  %s188_s23 = sshll.u32 %s368_s2, 4  ;;  %s187_s21 = int_to_ptr.vmem [resolvable:$true] %s186_s21  ;;  %s189_s23 = int_to_ptr.hbm [resolvable:$true] %s188_s23 }
   0xe   :  { %v214_v14 = vpop.eup %213 }
   0xf   :  { %v33_v2 = vld.sshfl [vmem:[#allocation1] sm:$0xff pattern:$0x75316420]  ;;  %v34_v3 = vld.sshfl [vmem:[#allocation1 + $0x8] sm:$0xff pattern:$0x75316420]  ;;  %vm58_vm1 = vweird.f32 %v214_v14  ;;  %v216_v42 = vpop.eup %215 }
  0x10   :  { %v37_v4 = vld.sshfl [vmem:[#allocation1 + $0x10] sm:$0xff pattern:$0x75316420]  ;;  %v38_v5 = vld.sshfl [vmem:[#allocation1 + $0x18] sm:$0xff pattern:$0x75316420]  ;;  %vm98_vm2 = vweird.f32 %v216_v42 }
  0x11   :  { %v44_v6 = vsel %vm43_vm0, %v33_v2, 0.0  ;;  %v45_v7 = vsel %vm43_vm0, %v34_v3, 0.0  ;;  %v47_v8 = vsel %vm43_vm0, %v37_v4, 0.0  ;;  %v49_v10 = vsel %vm43_vm0, %v38_v5, 0.0 }
  0x12   :  { %v46_v9 = vadd.f32 %v45_v7, %v44_v6  ;;  %v54_v15 = vmul.f32 512.0, %v214_v14  ;;  %v94_v43 = vmul.f32 511.0, %v216_v42 }
  0x14   :  { %v48_v11 = vadd.f32 %v47_v8, %v46_v9  ;;  %v55_v16 = vsub.f32 1.0, %v54_v15  ;;  %v95_v44 = vsub.f32 1.0, %v94_v43 }
  0x16   :  { %v50_v12 = vadd.f32 %v49_v10, %v48_v11  ;;  %v56_v17 = vmul.f32 %v214_v14, %v55_v16  ;;  %v96_v45 = vmul.f32 %v216_v42, %v95_v44 }
  0x18   :  { %51 = vadd.xlane.f32.xlu0 %v50_v12  ;;  %v57_v18 = vadd.f32 %v214_v14, %v56_v17  ;;  %v97_v46 = vadd.f32 %v216_v42, %v96_v45 }
  0x1a   :  { %v59_v21 = vsel %vm58_vm1, %v214_v14, %v57_v18  ;;  %v99_v47 = vsel %vm98_vm2, %v216_v42, %v97_v46 }
  0x8b   :  { %v52_v23 = vpop.xlane.xlu0 %51 }
  0x8c   :  { %v342_v24 = vmul.f32 %v59_v21, %v52_v23 }
  0x8e   :  { %v65_v25 = vperm.slane %v342_v24, %v340_v22  ;;  %v130_v8 = vsub.f32 0.0, %v342_v24 }
  0x90   :  { %v67_v26 = vsub.f32 %v330_v0, %v65_v25  ;;  %v68_v27 = vsub.f32 %v332_v1, %v65_v25 }
  0x92   :  { %v69_v28 = vmul.f32 %v67_v26, %v67_v26  ;;  %v70_v29 = vmul.f32 %v68_v27, %v68_v27 }
  0x94   :  { %73 = vst [vmem:[#allocation1] ss:$2 sm:$0xff] %v69_v28 }
  0x95   :  { %77 = vst [vmem:[#allocation1 + $0x10] ss:$2 sm:$0xff] %v70_v29 }
  0x9b   :  { %v74_v30 = vld.sshfl [vmem:[#allocation1] sm:$0xff pattern:$0x75316420]  ;;  %v75_v31 = vld.sshfl [vmem:[#allocation1 + $0x8] sm:$0xff pattern:$0x75316420] }
  0x9c   :  { %v78_v32 = vld.sshfl [vmem:[#allocation1 + $0x10] sm:$0xff pattern:$0x75316420]  ;;  %v84_v33 = vsel %vm43_vm0, %v74_v30, 0.0  ;;  %v85_v34 = vsel %vm43_vm0, %v75_v31, 0.0 }
  0x9d   :  { %v79_v35 = vld.sshfl [vmem:[#allocation1 + $0x18] sm:$0xff pattern:$0x75316420]  ;;  %v86_v36 = vadd.f32 %v85_v34, %v84_v33  ;;  %v87_v37 = vsel %vm43_vm0, %v78_v32, 0.0 }
  0x9e   :  { %v89_v39 = vsel %vm43_vm0, %v79_v35, 0.0 }
  0x9f   :  { %v88_v38 = vadd.f32 %v87_v37, %v86_v36 }
  0xa1   :  { %v90_v40 = vadd.f32 %v89_v39, %v88_v38 }
  0xa3   :  { %91 = vadd.xlane.f32.xlu0 %v90_v40 }
 0x116   :  { %v92_v48 = vpop.xlane.xlu0 %91 }
 0x117   :  { %v100_v49 = vmul.f32 %v99_v47, %v92_v48 }
 0x119   :  { %v101_v50 = vmax.f32 %v100_v49, 0.0 }
 0x11b   :  { %217 = vrsqrt.f32 %v101_v50  ;;  %vm109_vm3 = vcmp.eq.f32.partialorder %v101_v50, inf  ;;  %v112_v58 = vand.u32 2147483648, %v101_v50  ;;  %vm111_vm4 = vcmp.eq.f32.partialorder %v101_v50, 0.0 }
 0x121   :  { %v218_v51 = vpop.eup %217 }
 0x122   :  { %v103_v52 = vmul.f32 %v218_v51, %v101_v50 }
 0x124   :  { %v104_v53 = vmul.f32 %v218_v51, %v103_v52 }
 0x126   :  { %v105_v54 = vmul.f32 0.5, %v104_v53 }
 0x128   :  { %v106_v55 = vsub.f32 1.5, %v105_v54 }
 0x12a   :  { %v107_v56 = vmul.f32 %v218_v51, %v106_v55 }
 0x12c   :  { %v108_v57 = vmul.f32 %v107_v56, %v101_v50 }
 0x12e   :  { %v110_v59 = vsel %vm109_vm3, %v101_v50, %v108_v57 }
 0x12f   :  { %v113_v60 = vsel %vm111_vm4, %v112_v58, %v110_v59 }
 0x130   :  { %v114_v61 = vadd.f32 1e-06, %v113_v60 }
 0x132   :  { %219 = vrcp.f32 %v114_v61  ;;  %v126_v3 = vand.u32 2147483648, %v114_v61  ;;  %v124_v5 = vand.u32 2147483647, %v114_v61  ;;  %vm120_vm6 = vweird.f32 %v114_v61 }
 0x134   :  { %v127_v7 = vor.u32 1.1754944e-38, %v126_v3  ;;  %vm125_vm8 = vcmp.eq.f32.partialorder %v124_v5, 8.507059e+37 }
 0x138   :  { %v220_v62 = vpop.eup %219 }
 0x139   :  { %v116_v63 = vmul.f32 %v220_v62, %v114_v61  ;;  %vm121_vm5 = vweird.f32 %v220_v62 }
 0x13a   :  { %vm122_vm7 = vmor %vm120_vm6, %vm121_vm5 }
 0x13b   :  { %v117_v2 = vsub.f32 1.0, %v116_v63 }
 0x13d   :  { %v118_v4 = vmul.f32 %v220_v62, %v117_v2 }
 0x13f   :  { %v119_v6 = vadd.f32 %v220_v62, %v118_v4 }
 0x141   :  { %v123_v9 = vsel %vm122_vm7, %v220_v62, %v119_v6 }
 0x142   :  { %v128_v10 = vsel %vm125_vm8, %v127_v7, %v123_v9 }
 0x143   :  { %v150_v11 = vand.u32 2147483647, %v128_v10  ;;  %v131_v12 = vmul.f32 %v130_v8, %v128_v10  ;;  %v136_v13 = vperm.slane %v128_v10, %v340_v22 }
 0x145   :  { %221 = vlog2.f32 %v150_v11  ;;  %v138_v14 = vmul.f32 %v136_v13, %v330_v0  ;;  %v139_v15 = vmul.f32 %v136_v13, %v332_v1  ;;  %v144_v16 = vperm.slane %v131_v12, %v340_v22 }
 0x147   :  { %v146_v17 = vadd.f32 %v144_v16, %v138_v14  ;;  %v147_v18 = vadd.f32 %v144_v16, %v139_v15 }
 0x149   :  { %148 = vst [vmem:[#allocation5] sm:$0xff] %v146_v17 }
 0x14a   :  { %149 = vst [vmem:[#allocation5 + $0x8] sm:$0xff] %v147_v18 }
 0x14b   :  { %v222_v19 = vpop.eup %221  ;;  %180 = dma.vmem_to_hbm [thread:$0]  %s173_s19, 256, %s175_s17, [#allocation4], %s302_s14, %s302_s14, %s303_s15  }
 0x14c   :  { %v152_v20 = vmul.f32 0.6931472, %v222_v19 }
 0x14e   :  { %v154_v21 = vsel %vm153_vm9, %v152_v20, 0.0 }
 0x14f   :  { %155 = vadd.xlane.f32.xlu1 %v154_v21 }
 0x1c2   :  { %v156_v0 = vpop.xlane.xlu1 %155 }
 0x1c3   :  { %v157_v1 = vrot.slane %v156_v0, 4 }
 0x1c5   :  { %v158_v22 = vadd.f32 %v157_v1, %v156_v0 }
 0x1c7   :  { %v159_v23 = vrot.slane %v158_v22, 2 }
 0x1c9   :  { %v160_v24 = vadd.f32 %v159_v23, %v158_v22 }
 0x1cb   :  { %v161_v25 = vrot.slane %v160_v24, 1 }
 0x1cd   :  { %v162_v26 = vadd.f32 %v161_v25, %v160_v24 }
 0x1cf   :  { %203 = vpush %v162_v26 }
 0x200   :  { %s204_s24 = spop %203 }
 0x201   :  { %v164_v27 = vstv %s204_s24 }
 0x202   :  { %v165_v28 = vmul.f32 256.0, %v164_v27 }
 0x204   :  { %167 = vst.msk [vmem:[#allocation6] sm:$0x1] %vm166_vm10, %v165_v28 }
 0x205   :  { %191 = dma.vmem_to_hbm [thread:$0]  %s187_s21, 16, %s189_s23, [#allocation7]  }
 0x206   :  { %297 = dma.done.wait [#allocation4], 256  }
 0x207   :  { %298 = vsyncadd [#allocation4], 4294967040 }
 0x208   :  { %299 = dma.done.wait [#allocation7], 16  }
 0x209   :  { %300 = vsyncadd [#allocation7], 4294967280 }
 0x20a   :  { %200 = vsyncpa [#allocation3], 1 }
 0x20b   :  { %201 = vsyncpa [#allocation4], 1 }
 0x20c   :  { %202 = vsyncpa [#allocation7], 1 }

</bundles_post_ra>
